<compile_context>
chip_gen: v5e
topology: v5e:2x2
jax: 0.10.0
libtpu: 0.0.40
codegen_flags: <defaults>
</compile_context>

<pallas_src>
import functools

import jax
import jax.numpy as jnp
import numpy as np
from jax.experimental import pallas as pl
from jax.experimental.pallas import tpu as pltpu


# -------------------- STFT config (mirrors STFTConfig dataclass) -------------
N_FFT = 16
HOP = 4
WIN_LENGTH = 16
CENTER = True
WINDOW = "hann_window"        # periodic=False
RETURN_COMPLEX = False
PADDING_MODE = "reflect"      # stored by the wrapper
SCALE_FACTOR = 0              # stored by the wrapper (unused in forward)

F_BINS = N_FFT // 2 + 1
PAD = N_FFT // 2

LANES = 128                   # output samples per kernel row (lane-dense)
HALO = 16                     # halo samples on each side of a 128-sample row
SLAB = LANES + 2 * HALO       # 160 contiguous input samples per row
ROW_ALIGN = 16                # sublane alignment (safe for bf16 packing)
TM_MAX = 1024                 # rows per grid step (1024..2048 is the plateau)


def _cdiv(a, b):
    return (a + b - 1) // b


def _round_up(a, b):
    return _cdiv(a, b) * b


def hann_window_nonperiodic(n):
    # torch.hann_window(n, periodic=False)
    k = np.arange(n, dtype=np.float64)
    return 0.5 - 0.5 * np.cos(2.0 * np.pi * k / (n - 1))


# -------------------- precompute (hoisted out of the per-call forward) -------
def build_frame_operator_np(window, gr, gi):
    """(n_fft, n_fft) matrix A: frame -> analysis-window DFT -> per-frequency
    complex gain ("net") -> conj-symmetric inverse DFT -> synthesis window."""
    w = np.asarray(window, np.float64)
    gr = np.asarray(gr, np.float64).reshape(1, F_BINS)
    gi = np.asarray(gi, np.float64).reshape(1, F_BINS)
    n = np.arange(N_FFT, dtype=np.float64)
    f = np.arange(F_BINS, dtype=np.float64)
    ang_f = 2.0 * np.pi * np.outer(n, f) / N_FFT              # (N, F)
    cf = w[:, None] * np.cos(ang_f)                           # Re analysis
    sf = -w[:, None] * np.sin(ang_f)                          # Im analysis
    sym = np.where((f == 0) | (f == N_FFT // 2), 1.0, 2.0)    # conj symmetry
    ang_i = 2.0 * np.pi * np.outer(f, n) / N_FFT              # (F, N)
    ci = (sym[:, None] / N_FFT) * np.cos(ang_i)
    si = -(sym[:, None] / N_FFT) * np.sin(ang_i)
    a = (cf * gr - sf * gi) @ ci + (cf * gi + sf * gr) @ si   # (N, N)
    return a * w[None, :]                                     # synthesis win


def build_banded_operator_np(a):
    """(SLAB, LANES) banded operator: 160 contiguous padded-input samples
    (halo 16 each side) -> 128 contiguous overlap-added output samples.
    Built over the full hop-lattice; boundary frames are corrected later."""
    bm = np.zeros((SLAB, LANES), np.float64)
    for o in range(-N_FFT + HOP, LANES, HOP):     # frame offsets rel. row start
        for n in range(N_FFT):
            s = o + n + HALO
            if not (0 <= s < SLAB):
                continue
            for m in range(N_FFT):
                q = o + m
                if 0 <= q < LANES:
                    bm[s, q] += a[n, m]
    return bm


def prepare_stft_wrapper(window, gr, gi, T):
    """One-time precompute: fused banded operator, 1/envelope, boundary-frame
    correction blocks.  Depends only on (window, gain, T)."""
    assert T > PAD, "reflect padding requires T > n_fft//2"
    T_pad = T + 2 * PAD
    nf = 1 + (T_pad - N_FFT) // HOP
    out_len = (nf - 1) * HOP + N_FFT
    R = _cdiv(out_len, LANES)                     # 128-sample output rows/item

    a = build_frame_operator_np(window, gr, gi)
    bm = build_banded_operator_np(a)

    # exact torch.istft window^2 envelope over the *valid* frames only
    w2 = np.asarray(window, np.float64) ** 2
    env = np.zeros(out_len, np.float64)
    idx = (np.arange(nf)[:, None] * HOP + np.arange(N_FFT)[None, :]).ravel()
    np.add.at(env, idx, np.tile(w2, nf))
    env_kept = env[PAD:PAD + T]
    assert env_kept.min() > 1e-8, "NOLA violated: window/hop envelope ~ 0"

    # phantom frames the banded lattice adds but torch.stft does not produce
    # (offsets <0 or >= nf*hop); subtract their exact contribution on the
    # trimmed output.  Each is a tiny static (B, <=12) @ (<=12, <=4) matmul.
    corrections = []
    phantom = list(range(-N_FFT + HOP, 0, HOP)) + list(range(nf * HOP, T_pad, HOP))
    for o in phantom:
        m0, m1 = max(0, -o), min(N_FFT, T_pad - o)        # valid input taps
        q0, q1 = max(0, PAD - o), min(N_FFT, PAD + T - o)  # taps hitting kept y
        if m0 >= m1 or q0 >= q1:
            continue
        corrections.append((o + m0, o + m1,               # x_pad slice
                            o + q0 - PAD, o + q1 - PAD,   # trimmed-y slice
                            jnp.asarray(a[m0:m1, q0:q1], jnp.float32)))

    return dict(
        T=T, T_pad=T_pad, nf=nf, out_len=out_len, R=R,
        op=jnp.asarray(bm, jnp.float32),
        inv_env=jnp.asarray(1.0 / env_kept, jnp.float32),
        corrections=corrections,
    )


# -------------------- Pallas kernel -------------------------------------------
def fused_banded_kernel(slab_ref, op_ref, out_ref):
    # (TM, 160) @ (160, 128) on the MXU, f32 accumulation, store in the
    # compute dtype (bf16 on the fast path) -> lane-dense 128-wide stores.
    out_ref[...] = jnp.dot(slab_ref[...], op_ref[...],
                           preferred_element_type=jnp.float32
                           ).astype(out_ref.dtype)


# -------------------- full wrapper forward ------------------------------------
def stft_model_wrapper_forward(x, pre, compute_dtype=jnp.bfloat16):
    """x: (B, 1, T) float32 -> (B, 1, T) float32."""
    b, c, t = x.shape
    assert c == 1 and t == pre["T"]
    R, T_pad = pre["R"], pre["T_pad"]

    xs = x[:, 0, :].astype(jnp.float32)                        # squeeze(1)
    x_pad = jnp.pad(xs, ((0, 0), (PAD, PAD)), mode=PADDING_MODE)

    # cast early: all slab-building glue moves half-width data on the bf16 path
    xc = x_pad.astype(compute_dtype)
    ext_len = (R + 1) * LANES
    x_ext = jnp.pad(xc, ((0, 0), (HALO, ext_len - HALO - T_pad)))

    # contiguous 160-sample slabs via reshape + slice + one concat (no gather):
    # slab[b, r, :] = x_ext[b, 128*r : 128*r + 160]
    part0 = x_ext[:, :R * LANES].reshape(b, R, LANES)
    part1 = x_ext[:, LANES:].reshape(b, R, LANES)[:, :, :2 * HALO]
    slab = jnp.concatenate([part0, part1], axis=-1).reshape(b * R, SLAB)

    # tile selection: <= ROW_ALIGN rows of padding per step, >=2 even steps so
    # both v7x TensorCores get work; rows per step capped at TM_MAX.
    m = b * R
    m_al = _round_up(max(m, 1), ROW_ALIGN)
    n_steps = max(2, _cdiv(m_al, TM_MAX))
    if n_steps % 2:
        n_steps += 1
    tm = _round_up(_cdiv(m_al, n_steps), ROW_ALIGN)
    m_total = n_steps * tm
    slab = jnp.pad(slab, ((0, m_total - m), (0, 0)))

    out_rows = pl.pallas_call(
        fused_banded_kernel,
        out_shape=jax.ShapeDtypeStruct((m_total, LANES), compute_dtype),
        grid=(n_steps,),
        in_specs=[
            pl.BlockSpec((tm, SLAB), lambda i: (i, 0)),        # signal slabs
            pl.BlockSpec((SLAB, LANES), lambda i: (0, 0)),     # fused operator
        ],
        out_specs=pl.BlockSpec((tm, LANES), lambda i: (i, 0)),
        compiler_params=pltpu.CompilerParams(
            dimension_semantics=("parallel",)),                # megacore shard
    )(slab, pre["op"].astype(compute_dtype))

    # rows are already overlap-added padded-output samples: trim center pad,
    # subtract the (exact) phantom boundary-frame contributions, normalize by
    # the precomputed reciprocal window^2 envelope.
    y = out_rows[:m].reshape(b, R * LANES)[:, PAD:PAD + t].astype(jnp.float32)
    for (s0, s1, d0, d1, a_blk) in pre["corrections"]:
        y = y.at[:, d0:d1].add(-(x_pad[:, s0:s1] @ a_blk))
    y = y * pre["inv_env"][None, :]
    return y[:, None, :]                                       # unsqueeze(1)


def make_forward(pre, compute_dtype):
    @jax.jit
    def fwd(x):
        return stft_model_wrapper_forward(x, pre, compute_dtype)
    return fwd


# -------------------- pure-JAX reference (fft + gather/scatter) ---------------
def reference_forward(x, window, gr, gi):
    b, _, t = x.shape
    xs = x[:, 0, :]
    w = jnp.asarray(window, jnp.float32)
    xp = jnp.pad(xs, ((0, 0), (PAD, PAD)), mode=PADDING_MODE)
    nf = 1 + (xp.shape[1] - N_FFT) // HOP
    idx = jnp.arange(nf)[:, None] * HOP + jnp.arange(N_FFT)[None, :]
    frames = xp[:, idx]                                        # (B, nf, N)
    spec = jnp.fft.rfft(frames * w, axis=-1)                   # (B, nf, F)
    spec = spec * (gr + 1j * gi)
    fr_t = jnp.fft.irfft(spec, n=N_FFT, axis=-1).astype(jnp.float32) * w
    out_len = (nf - 1) * HOP + N_FFT
    flat_idx = idx.reshape(-1)
    y = jnp.zeros((b, out_len), jnp.float32).at[:, flat_idx].add(
        fr_t.reshape(b, -1))
    env = jnp.zeros((out_len,), jnp.float32).at[flat_idx].add(
        jnp.tile(w ** 2, nf))
    y = y[:, PAD:PAD + t] / env[PAD:PAD + t][None, :]
    return y[:, None, :]


# -------------------- main -----------------------------------------------------
if __name__ == "__main__":
    key = jax.random.PRNGKey(0)
    k_x, k_gr, k_gi = jax.random.split(key, 3)

    B, T = 2, 64
    x = jax.random.normal(k_x, (B, 1, T), dtype=jnp.float32)

    window = hann_window_nonperiodic(WIN_LENGTH)               # numpy float64

    # deterministic synthetic "net": per-frequency complex gain near identity
    gr = 1.0 + 0.1 * jax.random.normal(k_gr, (F_BINS,), dtype=jnp.float32)
    gi = 0.1 * jax.random.normal(k_gi, (F_BINS,), dtype=jnp.float32)

    pre = prepare_stft_wrapper(window, gr, gi, T)              # hoisted once

    ref = jax.block_until_ready(reference_forward(x, window, gr, gi))

    # f32 path: strict check of the fused banded operator vs rfft/irfft ref.
    out_f32 = jax.block_until_ready(make_forward(pre, jnp.float32)(x))
    assert out_f32.shape == (B, 1, T), out_f32.shape
    np.testing.assert_allclose(np.asarray(out_f32), np.asarray(ref),
                               rtol=1e-3, atol=1e-3)

    # bf16 fast path (bf16 slabs, bf16 operator, bf16 kernel output, f32 acc).
    out = jax.block_until_ready(make_forward(pre, jnp.bfloat16)(x))
    assert out.shape == (B, 1, T), out.shape
    np.testing.assert_allclose(np.asarray(out), np.asarray(ref),
                               rtol=3e-2, atol=3e-2)

    # TODO(synk): the real `self.net` is an FFC generator supplied externally;
    # it is modeled here by the deterministic per-frequency complex gain above,
    # which is what allows folding STFT * net * ISTFT * window * OLA into one
    # banded matrix.
    print("KERNEL_OK")
</pallas_src>

<mosaic_0001>
module attributes {stable_mosaic.version = 11 : i64} {
  func.func @fused_banded_kernel(%arg0: i32, %arg1: memref<16x160xf32, #tpu.memory_space<vmem>>, %arg2: memref<160x128xf32, #tpu.memory_space<vmem>>, %arg3: memref<16x128xf32, #tpu.memory_space<vmem>>) attributes {dimension_semantics = [#tpu.dimension_semantics<parallel>], iteration_bounds = array<i64: 2>, scalar_prefetch = 0 : i64, scratch_operands = 0 : i64, tpu.core_type = #tpu.core_type<tc>, window_params = [{transform_indices = @transform_0, window_bounds = array<i64: 16, 160>}, {pipeline_mode = #tpu.pipeline_mode<synchronous>, transform_indices = @transform_1, window_bounds = array<i64: 160, 128>}, {transform_indices = @transform_2, window_bounds = array<i64: 16, 128>}]} {
    %c0 = arith.constant 0 : index
    %c0_0 = arith.constant 0 : index
    %0 = vector.load %arg1[%c0, %c0_0] : memref<16x160xf32, #tpu.memory_space<vmem>>, vector<16x160xf32>
    %c0_1 = arith.constant 0 : index
    %c0_2 = arith.constant 0 : index
    %1 = vector.load %arg2[%c0_1, %c0_2] : memref<160x128xf32, #tpu.memory_space<vmem>>, vector<160x128xf32>
    %cst = arith.constant dense<0.000000e+00> : vector<16x128xf32>
    %2 = tpu.matmul %0, %1, %cst {dimension_numbers = #tpu.dot_dimension_numbers<[1], [0], [0], [1], [0, 0, 1, 1], [], []>} : vector<16x160xf32>, vector<160x128xf32>, vector<16x128xf32> -> vector<16x128xf32>
    %c0_3 = arith.constant 0 : index
    %c0_4 = arith.constant 0 : index
    %3 = vector.load %arg3[%c0_3, %c0_4] : memref<16x128xf32, #tpu.memory_space<vmem>>, vector<16x128xf32>
    tpu.vector_store %arg3[%c0_3, %c0_4], %2 {strides = array<i32>} : memref<16x128xf32, #tpu.memory_space<vmem>>, vector<16x128xf32>,
    return
  }
  func.func @transform_0(%arg0: i32) -> (i32, i32) {
    %c0_i32 = arith.constant 0 : i32
    %c0_i32_0 = arith.constant 0 : i32
    return %arg0, %c0_i32 : i32, i32
  }
  func.func @transform_1(%arg0: i32) -> (i32, i32) {
    %c0_i32 = arith.constant 0 : i32
    %c0_i32_0 = arith.constant 0 : i32
    %c0_i32_1 = arith.constant 0 : i32
    return %c0_i32, %c0_i32_0 : i32, i32
  }
  func.func @transform_2(%arg0: i32) -> (i32, i32) {
    %c0_i32 = arith.constant 0 : i32
    %c0_i32_0 = arith.constant 0 : i32
    return %arg0, %c0_i32 : i32, i32
  }
}

</mosaic_0001>

<bundles_post_ra>
// kernel: fwd.1
= control target key start
LH: loop header
LB: loop body
LE: loop exit
PB: predicated region body
PF: predicated region fallthrough
CT: control target
= control target key end

     0   :  { %7 = vsyncpa [#allocation3], 0  ;;  %s428_s9 = smov 0   ;;  %s460_s0 = inlined_call_operand.vmem [shape: f32[32,160], index: 0, kind: input, shape index: {}]   ;;  %s461_s1 = inlined_call_operand.hbm [shape: f32[160,128], index: 1, kind: input, shape index: {}]   ;;  %s462_s2 = inlined_call_operand.vmem [shape: f32[32,128], index: 2, kind: output, shape index: {}]  }
   0x1 LB: > { %s102_s12 = sshll.u32 %s461_s1, 4  ;;  %s314_s13 = sadd.s32 4294967295, %s408_s9   ;;  %s408_s9 = sphi %s428_s9, %s13_s9   ;;  %s103_s12 = int_to_ptr.hbm [resolvable:$true] %s102_s12 }
   0x2   : > { %p316_p0 = scmp.ge.s32.totalorder %s408_s9, 1  ;;  %p91_p1 = scmp.lt.s32.totalorder %s408_s9, 3 }
   0x3   : > { %p355_p2 = scmp.eq.s32.totalorder %s314_s13, 0  ;;  %s410_s14 = smov [#allocation2]  }
   0x4   : > { %p92_p3 = pnand %p316_p0, %p91_p1  ;;  %s104_s15 = sshll.u32 %s410_s14, 4  ;;  %s105_s15 = int_to_ptr.vmem [resolvable:$true] %s104_s15 }
   0x5   : > { %s411_s16 = smov 128   ;;  %s412_s17 = smov 8  }
   0x6   : > { %p351_p4 = pneg %p92_p3  ;;  %130 = sbr.rel (%p92_p3) target bundleno = 179 (0xb3), region = 28 }
   0x8   : > { %p352_p5 = pnand %p355_p2, %p351_p4 }
   0xa   : > { %354 = dma.hbm_to_vmem [thread:$0]  (!%p352_p5), %s103_s12, 2560, %s105_s15, [#allocation3], %s411_s16, %s411_s16, %s412_s17  }
   0xb   : > { %403 = dma.done.wait (%p355_p2), [#allocation3], 2560  }
   0xc   : > { %405 = vsyncadd (%p355_p2), [#allocation3], 4294964736  ;;  %s321_s18 = sshll.u32 %s314_s13, 1  ;;  %v186_v0 = vld [vmem:[#allocation2 + $0x78] sm:$0xff]  ;;  %v185_v1 = vld [vmem:[#allocation2 + $0x70] sm:$0xff]  ;;  %vm191_vm0 = vcmask 261120  }
   0xd   : > { %p155_p6 = scmp.lt.s32.totalorder %s321_s18, 3  ;;  %198 = vmatpush.msra.mxu0 %v186_v0  ;;  %331 = vmatpush.msra.mxu2 %v186_v0  ;;  %v184_v2 = vld [vmem:[#allocation2 + $0x68] sm:$0xff]  ;;  %v183_v3 = vld [vmem:[#allocation2 + $0x60] sm:$0xff]  ;;  %v190_v4 = vld [vmem:[#allocation2 + $0x98] sm:$0xff] }
   0xe   : > { %v189_v5 = vld [vmem:[#allocation2 + $0x90] sm:$0xff]  ;;  %v182_v6 = vld [vmem:[#allocation2 + $0x58] sm:$0xff]  ;;  %233 = vmatpush.msra.mxu1 %v190_v4  ;;  %v188_v7 = vld [vmem:[#allocation2 + $0x88] sm:$0xff] }
   0xf   : > { %s464_s18 = smov (!%p155_p6, %s321_s18), 3  ;;  %199 = vmatpush.msra.mxu0 %v185_v1  ;;  %332 = vmatpush.msra.mxu2 %v185_v1  ;;  %v181_v8 = vld [vmem:[#allocation2 + $0x50] sm:$0xff]  ;;  %v187_v9 = vld [vmem:[#allocation2 + $0x80] sm:$0xff]  ;;  %v180_v10 = vld [vmem:[#allocation2 + $0x48] sm:$0xff] }
  0x10   : > { %s330_s19 = sshll.u32 %s464_s18, 4  ;;  %234 = vmatpush.msra.mxu1 %v189_v5  ;;  %v179_v12 = vld [vmem:[#allocation2 + $0x40] sm:$0xff]  ;;  %v178_v13 = vld [vmem:[#allocation2 + $0x38] sm:$0xff]  ;;  %v177_v14 = vld [vmem:[#allocation2 + $0x30] sm:$0xff]  ;;  %s325_s23 = sshll.u32 %s464_s18, 3 }
  0x11   : > { %200 = vmatpush.msra.mxu0 %v184_v2  ;;  %333 = vmatpush.msra.mxu2 %v184_v2  ;;  %s445_s22 = scalar_lea.vmem %s460_s0, %s330_s19  ;;  %v176_v15 = vld [vmem:[#allocation2 + $0x28] sm:$0xff]  ;;  %v175_v17 = vld [vmem:[#allocation2 + $0x20] sm:$0xff]  ;;  %v174_v18 = vld [vmem:[#allocation2 + $0x18] sm:$0xff]  ;;  %s165_s26 = scalar_lea.vmem %s462_s2, %s325_s23 }
  0x12   : > { %235 = vmatpush.msra.mxu1 %v188_v7  ;;  %v168_v11 = vld [vmem:[%s445_s22 + $0x8] sm:$0xff]  ;;  %v170_v16 = vld [vmem:[%s445_s22 + $0x18] sm:$0xff]  ;;  %v173_v19 = vld [vmem:[#allocation2 + $0x10] sm:$0xff] }
  0x13   : > { %201 = vmatpush.msra.mxu0 %v183_v3  ;;  %334 = vmatpush.msra.mxu2 %v183_v3  ;;  %v172_v20 = vld [vmem:[#allocation2 + $0x8] sm:$0xff]  ;;  %v171_v21 = vld [vmem:[#allocation2] sm:$0xff]  ;;  %v169_v23 = vld [vmem:[%s445_s22 + $0x10] sm:$0xff] }
  0x14   : > { %236 = vmatpush.msra.mxu1 %v187_v9  ;;  %v167_v22 = vld [vmem:[%s445_s22] sm:$0xff] }
  0x15   : > { %202 = vmatpush.msra.mxu0 %v182_v6  ;;  %335 = vmatpush.msra.mxu2 %v182_v6 }
  0x16   : > { %326 = vmatmul.msk.f32.vlgmr.msra.gmra.mxu1 %vm191_vm0, %v168_v11 }
  0x17   : > { %203 = vmatpush.msra.mxu0 %v181_v8  ;;  %336 = vmatpush.msra.mxu2 %v181_v8 }
  0x19   : > { %204 = vmatpush.msra.mxu0 %v180_v10  ;;  %337 = vmatpush.msra.mxu2 %v180_v10 }
  0x1b   : > { %205 = vmatpush.msra.mxu0 %v179_v12  ;;  %338 = vmatpush.msra.mxu2 %v179_v12 }
  0x1d   : > { %206 = vmatpush.msra.mxu0 %v178_v13  ;;  %339 = vmatpush.msra.mxu2 %v178_v13 }
  0x1e   : > { %327 = vmatmul.msk.f32.gmra.mxu1 %vm191_vm0, %v170_v16 }
  0x1f   : > { %207 = vmatpush.msra.mxu0 %v177_v14  ;;  %340 = vmatpush.msra.mxu2 %v177_v14 }
  0x21   : > { %208 = vmatpush.msra.mxu0 %v176_v15  ;;  %341 = vmatpush.msra.mxu2 %v176_v15 }
  0x23   : > { %209 = vmatpush.msra.mxu0 %v175_v17  ;;  %342 = vmatpush.msra.mxu2 %v175_v17 }
  0x25   : > { %210 = vmatpush.msra.mxu0 %v174_v18  ;;  %343 = vmatpush.msra.mxu2 %v174_v18 }
  0x27   : > { %211 = vmatpush.msra.mxu0 %v173_v19  ;;  %344 = vmatpush.msra.mxu2 %v173_v19 }
  0x29   : > { %212 = vmatpush.msra.mxu0 %v172_v20  ;;  %345 = vmatpush.msra.mxu2 %v172_v20 }
  0x2b   : > { %213 = vmatpush.msra.mxu0 %v171_v21  ;;  %346 = vmatpush.msra.mxu2 %v171_v21 }
  0x2c   : > { %214 = vmatmul.f32.vlgmr.msra.gmra.mxu0 %v167_v22  ;;  %217 = vmatmul.f32.vlgmr.msra.gmra.mxu2 %v169_v23 }
  0x93   : > { %v238_v24 = vpop.f32.mrf.mxu1 }
  0x9b   : > { %v241_v27 = vpop.f32.mrf.mxu1 }
  0xa9   : > { %v215_v25 = vpop.f32.mrf.mxu0 }
  0xaa   : > { %v239_v26 = vadd.f32 %v238_v24, %v215_v25 }
  0xac   : > { %244 = vst [vmem:[%s165_s26] sm:$0xff] %v239_v26 }
  0xaf   : > { %v218_v28 = vpop.f32.mrf.mxu2 }
  0xb0   : > { %v242_v29 = vadd.f32 %v241_v27, %v218_v28 }
  0xb2   : > { %245 = vst [vmem:[%s165_s26 + $0x8] sm:$0xff] %v242_v29 }
  0xb3 PF: > { %s13_s9 = sadd.s32 1, %s408_s9  }
  0xb4   : > { %p10_p7 = scmp.ge.s32.totalorder %s13_s9, 4  }
  0xb6   :  { %12 = sbr.rel (!%p10_p7) target bundleno = 1 (0x1), region = 63 }
  0xbb   :  { %268 = vsyncpa [#allocation3], 1 }
  0xbc   :  { %270 = vsyncpa [#allocation3 + $0x1], 1 }

</bundles_post_ra>
